<compile_context>
chip_gen: v7x
topology: tpu7x:2x2x1
jax: 0.10.0
libtpu: 0.0.40
codegen_flags: <defaults>
</compile_context>

<pallas_src>
import functools

import jax
import jax.numpy as jnp
from jax.experimental import pallas as pl
from jax.experimental.pallas import tpu as pltpu

_LANES = 512                      # lane-dense last dim (multiple of 128)
_SUBLANES = 8
_PAD_ELEMS = _SUBLANES * _LANES   # pad flat size to a multiple of this (4096)
_MAX_TILE_ROWS = 1024             # 1024 x 512 x f32 = 2 MiB per tile


# ---------------------------------------------------------------------------
# Backward kernel: out = -alpha * g  (scale in f32, cast back to grad dtype)
# ---------------------------------------------------------------------------
def _neg_scale_kernel(g_ref, o_ref, *, neg_alpha):
    g = g_ref[...]
    o_ref[...] = (g.astype(jnp.float32) * neg_alpha).astype(o_ref.dtype)


def _pick_tile_rows(rows):
    """rows is a multiple of 8. Pick a tile that amortises per-step overhead
    but still yields >=2 grid steps when possible (keeps both v7x TCs busy)."""
    tr = min(rows, _MAX_TILE_ROWS)
    if tr == rows and rows >= 2 * _SUBLANES:
        tr = ((rows // 2 + _SUBLANES - 1) // _SUBLANES) * _SUBLANES
    return tr


def _grl_neg_scale(g, alpha):
    """Pallas-backed `-alpha * g`, any shape/dtype."""
    orig_shape = g.shape
    orig_dtype = g.dtype
    n = g.size

    flat = g.reshape(-1)
    padded_n = pl.cdiv(n, _PAD_ELEMS) * _PAD_ELEMS
    if padded_n != n:
        flat = jnp.pad(flat, (0, padded_n - n))

    rows = padded_n // _LANES
    g2 = flat.reshape(rows, _LANES)

    tile_rows = _pick_tile_rows(rows)
    grid = pl.cdiv(rows, tile_rows)

    out = pl.pallas_call(
        functools.partial(_neg_scale_kernel, neg_alpha=-float(alpha)),
        out_shape=jax.ShapeDtypeStruct((rows, _LANES), orig_dtype),
        grid=(grid,),
        in_specs=[pl.BlockSpec((tile_rows, _LANES), lambda i: (i, 0))],
        out_specs=pl.BlockSpec((tile_rows, _LANES), lambda i: (i, 0)),
        input_output_aliases={0: 0},
        compiler_params=pltpu.CompilerParams(
            dimension_semantics=("parallel",),
            vmem_limit_bytes=32 * 1024 * 1024),
    )(g2)

    out_flat = out.reshape(-1)
    if padded_n != n:
        out_flat = out_flat[:n]
    return out_flat.reshape(orig_shape)


# ---------------------------------------------------------------------------
# GRL: forward = identity (free), backward = -alpha * grad (Pallas kernel)
# ---------------------------------------------------------------------------
def make_grl(alpha=1.0):
    """Build a GRL callable with a fixed alpha (mirrors GRL(alpha=...))."""

    @jax.custom_vjp
    def grl(x):
        # Identity forward: JAX arrays are immutable, so `.clone()` is a no-op.
        return x

    def grl_fwd(x):
        return x, None

    def grl_bwd(_res, g):
        return (_grl_neg_scale(g, alpha),)

    grl.defvjp(grl_fwd, grl_bwd)
    return grl


# ---------------------------------------------------------------------------
# Self-test
# ---------------------------------------------------------------------------
if __name__ == "__main__":
    key = jax.random.PRNGKey(0)
    k1, k2, k3 = jax.random.split(key, 3)

    alpha = 1.5
    grl = make_grl(alpha)

    # Main small test shape (batch=2, channels=4, spatial=16x16).
    x = jax.random.normal(k1, (2, 4, 16, 16), jnp.float32)

    # Forward: identity.
    y = jax.block_until_ready(grl(x))
    assert y.shape == x.shape
    assert jnp.allclose(y, x), "forward is not identity"

    # Backward: gradient of sum(grl(x)) must be -alpha * ones (runs the kernel).
    g = jax.block_until_ready(jax.grad(lambda v: jnp.sum(grl(v)))(x))
    assert jnp.allclose(g, -alpha * jnp.ones_like(x), atol=1e-6), "bad reversed grad"

    # Non-128-divisible element count exercises the pad-and-slice path.
    x_odd = jax.random.normal(k2, (3, 5, 7), jnp.float32)
    y_odd = jax.block_until_ready(grl(x_odd))
    g_odd = jax.block_until_ready(jax.grad(lambda v: jnp.sum(grl(v)))(x_odd))
    assert jnp.allclose(y_odd, x_odd)
    assert jnp.allclose(g_odd, -alpha * jnp.ones_like(x_odd), atol=1e-6)

    # Larger array exercises the multi-step tiled (rows, 512) path (grid >= 2).
    x_big = jax.random.normal(k3, (2048, 256), jnp.float32)
    y_big = jax.block_until_ready(grl(x_big))
    g_big = jax.block_until_ready(
        jax.grad(lambda v: jnp.sum(grl(v) * 2.0))(x_big))
    assert jnp.allclose(y_big, x_big)
    assert jnp.allclose(g_big, -alpha * 2.0 * jnp.ones_like(x_big), atol=1e-5)

    # bf16 gradients: scale done in f32, cast back.
    x_bf = x.astype(jnp.bfloat16)
    g_bf = jax.block_until_ready(
        jax.grad(lambda v: jnp.sum(grl(v).astype(jnp.float32)))(x_bf))
    assert g_bf.dtype == jnp.bfloat16
    assert jnp.allclose(g_bf.astype(jnp.float32), -alpha, atol=1e-2)

    print("KERNEL_OK")
</pallas_src>

<mosaic_0001>
module attributes {stable_mosaic.version = 11 : i64} {
  func.func @_neg_scale_kernel(%arg0: i32, %arg1: memref<8x512xf32, #tpu.memory_space<vmem>>, %arg2: memref<8x512xf32, #tpu.memory_space<vmem>>) attributes {dimension_semantics = [#tpu.dimension_semantics<parallel>], iteration_bounds = array<i64: 1>, scalar_prefetch = 0 : i64, scratch_operands = 0 : i64, tpu.core_type = #tpu.core_type<tc>, window_params = [{transform_indices = @transform_0, window_bounds = array<i64: 8, 512>}, {transform_indices = @transform_1, window_bounds = array<i64: 8, 512>}]} {
    %c0 = arith.constant 0 : index
    %c0_0 = arith.constant 0 : index
    %0 = vector.load %arg1[%c0, %c0_0] : memref<8x512xf32, #tpu.memory_space<vmem>>, vector<8x512xf32>
    %cst = arith.constant -1.500000e+00 : f32
    %1 = vector.broadcast %cst : f32 to vector<8x512xf32>
    %2 = arith.mulf %0, %1 : vector<8x512xf32>
    %c0_1 = arith.constant 0 : index
    %c0_2 = arith.constant 0 : index
    %3 = vector.load %arg2[%c0_1, %c0_2] : memref<8x512xf32, #tpu.memory_space<vmem>>, vector<8x512xf32>
    tpu.vector_store %arg2[%c0_1, %c0_2], %2 {strides = array<i32>} : memref<8x512xf32, #tpu.memory_space<vmem>>, vector<8x512xf32>,
    return
  }
  func.func @transform_0(%arg0: i32) -> (i32, i32) {
    %c0_i32 = arith.constant 0 : i32
    %c0_i32_0 = arith.constant 0 : i32
    return %arg0, %c0_i32 : i32, i32
  }
  func.func @transform_1(%arg0: i32) -> (i32, i32) {
    %c0_i32 = arith.constant 0 : i32
    %c0_i32_0 = arith.constant 0 : i32
    return %arg0, %c0_i32 : i32, i32
  }
}

</mosaic_0001>

<bundles_post_ra>
// kernel: tpu_custom_call.1
= control target key start
LH: loop header
LB: loop body
LE: loop exit
PB: predicated region body
PF: predicated region fallthrough
CT: control target
= control target key end

     0   :  { %6 = vsyncpa [#allocation3], 0  ;;  %s134_s0 = inlined_call_operand.hbm [shape: f32[8,512], index: 0, kind: input, shape index: {}, may-alias: {0,1}]   ;;  %s135_s1 = inlined_call_operand.hbm [shape: f32[8,512], index: 1, kind: output, shape index: {}, may-alias: {0,1}]  }
   0x1   :  { %7 = vsyncpa [#allocation4], 0  ;;  %s98_s6 = smov [#allocation2]   ;;  %s50_s10 = scalar_lea.hbm %s134_s0, 512 }
   0x2   :  { %s14_s7 = sshll.u32 %s98_s6, 4  ;;  %p51_p0 = scmp.ne.s32.totalorder %s134_s0, %s50_s10  ;;  %s15_s7 = int_to_ptr.vmem [resolvable:$true] %s14_s7 }
   0x3   :  { %p54_p1 = scmp.lt.u32.totalorder %s50_s10, %s134_s0 }
   0x5   :  { %p56_p2 = pnand %p54_p1, %p51_p0 }
   0x7   :  { %59 = shalt.err (!%p56_p2)
}
   0x8   :  { %s60_s15 = scalar_lea.vmem %s15_s7, 512  ;;  %p65_p4 = scmp.lt.s32.totalorder %s15_s7, %s15_s7 }
   0x9   :  { %p61_p3 = scmp.ne.s32.totalorder %s15_s7, %s60_s15  ;;  %p66_p5 = scmp.lt.s32.totalorder %s60_s15, %s60_s15 }
   0xb   :  { %p67_p6 = por %p66_p5, %p65_p4 }
   0xd   :  { %p68_p7 = pnand %p67_p6, %p61_p3 }
   0xf   :  { %71 = shalt.err (!%p68_p7)
}
  0x10   :  { %17 = dma.hbm_to_vmem [thread:$0]  %s134_s0, 512, %s15_s7, [#allocation3]  }
  0x11   :  { %94 = dma.done.wait [#allocation3], 512  }
  0x12   :  { %95 = vsyncadd [#allocation3], 4294966784  ;;  %s99_s18 = smov [#allocation5]   ;;  %v21_v0 = vld [vmem:[#allocation2] sm:$0xff]  ;;  %v22_v1 = vld [vmem:[#allocation2 + $0x8] sm:$0xff] }
  0x13   :  { %s39_s19 = sshll.u32 %s99_s18, 4  ;;  %v23_v2 = vld [vmem:[#allocation2 + $0x10] sm:$0xff]  ;;  %v25_v3 = vmul.f32 -1.5, %v21_v0  ;;  %v26_v4 = vmul.f32 -1.5, %v22_v1  ;;  %v24_v6 = vld [vmem:[#allocation2 + $0x18] sm:$0xff]  ;;  %s40_s19 = int_to_ptr.vmem [resolvable:$true] %s39_s19 }
  0x14   :  { %v27_v5 = vmul.f32 -1.5, %v23_v2  ;;  %v28_v7 = vmul.f32 -1.5, %v24_v6  ;;  %s72_s20 = scalar_lea.vmem %s40_s19, 512  ;;  %p77_p9 = scmp.lt.s32.totalorder %s40_s19, %s40_s19 }
  0x15   :  { %29 = vst [vmem:[#allocation5] sm:$0xff] %v25_v3  ;;  %30 = vst [vmem:[#allocation5 + $0x8] sm:$0xff] %v26_v4  ;;  %p73_p8 = scmp.ne.s32.totalorder %s40_s19, %s72_s20  ;;  %p78_p10 = scmp.lt.s32.totalorder %s72_s20, %s72_s20 }
  0x16   :  { %31 = vst [vmem:[#allocation5 + $0x10] sm:$0xff] %v27_v5  ;;  %32 = vst [vmem:[#allocation5 + $0x18] sm:$0xff] %v28_v7 }
  0x17   :  { %p79_p11 = por %p78_p10, %p77_p9 }
  0x19   :  { %p80_p12 = pnand %p79_p11, %p73_p8 }
  0x1b   :  { %83 = shalt.err (!%p80_p12)
}
  0x1c   :  { %s84_s22 = scalar_lea.hbm %s135_s1, 512 }
  0x1d   :  { %p85_p13 = scmp.ne.s32.totalorder %s135_s1, %s84_s22  ;;  %p88_p0 = scmp.lt.u32.totalorder %s84_s22, %s135_s1 }
  0x1f   :  { %p90_p1 = pnand %p88_p0, %p85_p13 }
  0x21   :  { %93 = shalt.err (!%p90_p1)
}
  0x22   :  { %42 = dma.vmem_to_hbm [thread:$0]  %s40_s19, 512, %s135_s1, [#allocation4]  }
  0x23   :  { %96 = dma.done.wait [#allocation4], 512  }
  0x24   :  { %97 = vsyncadd [#allocation4], 4294966784 }
  0x25   :  { %46 = vsyncpa [#allocation3], 1 }
  0x26   :  { %47 = vsyncpa [#allocation4], 1 }

</bundles_post_ra>
